<compile_context>
chip_gen: v7x
topology: tpu7x:2x2x1
jax: 0.10.0
libtpu: 0.0.40
codegen_flags: <defaults>
</compile_context>

<pallas_src>
import functools

import jax
import jax.numpy as jnp
from jax.experimental import pallas as pl
from jax.experimental.pallas import tpu as pltpu


def _attn_pool_kernel(x_ref, q_ref, o_ref, *, scale: float):
    # x_ref: (TB, L, C)   q_ref: (TB, C)   o_ref: (TB, C)
    x = x_ref[...].astype(jnp.float32)   # no-op for f32 inputs
    q = q_ref[...].astype(jnp.float32)

    # scores[b, l] = sum_c x[b, l, c] * q[b, c]  — VPU multiply + XLU lane reduce.
    scores = jnp.sum(x * q[:, None, :], axis=-1)              # (TB, L) f32
    scores = scores * jnp.float32(scale)                       # scale on f32 logits

    # Numerically stable softmax over L (dense 2-D vregs: 8 batch rows per vreg).
    scores = scores - jnp.max(scores, axis=-1, keepdims=True)
    p = jnp.exp(scores)                                         # (TB, L) f32
    denom = jnp.sum(p, axis=-1, keepdims=True)                  # (TB, 1)
    r = pl.reciprocal(denom, approx=True)                       # EUP slot
    r = r * (2.0 - denom * r)                                   # Newton -> ~f32 exact
    p = p * r

    # out[b, c] = sum_l p[b, l] * x[b, l, c]  — VPU broadcast-mul + XLU sublane reduce.
    out = jnp.sum(p[:, :, None] * x, axis=1)                    # (TB, C) f32
    o_ref[...] = out.astype(o_ref.dtype)


def _vmem_capacity_bytes() -> int:
    try:
        return int(pltpu.get_tpu_info().vmem_capacity_bytes)
    except Exception:
        return 64 << 20  # conservative: smallest per-TC VMEM across v5e/v6e/v7x


def _per_row_work_bytes(L: int, C: int, dtype_bytes: int) -> int:
    # Double-buffered x slab in input dtype + ~3 f32-sized temporaries
    # (f32 copy of x, x*q product, p*x product) + small q/out buffers.
    return L * C * (2 * dtype_bytes + 12) + 16 * C


def _choose_batch_tile(B: int, L: int, C: int, dtype_bytes: int,
                       vmem_cap_bytes: int) -> int:
    """Pick TB: as large as the VMEM working-set budget allows (amortizes the
    ~0.35 us/step overhead), multiple of 8 unless it covers the whole batch,
    and keeping >=2 grid steps when the batch allows it (v7x has 2 TCs)."""
    per_row = max(1, _per_row_work_bytes(L, C, dtype_bytes))
    budget = min(max(vmem_cap_bytes - (16 << 20), 16 << 20), 72 << 20)
    tb = max(8, (budget // per_row) // 8 * 8)
    tb = min(tb, 2048)
    if tb >= B:
        tb = B                      # single block; equal-to-full-dim is always legal
    if B >= 16 and pl.cdiv(B, tb) < 2:
        tb = max(8, ((tb + 1) // 2) // 8 * 8)   # >=2 steps for megacore sharding
    return tb


def attention_pool(x: jax.Array, q: jax.Array, num_heads: int = 1,
                   block_b: int | None = None) -> jax.Array:
    """x: (B, L, C), q: (B, C) -> (B, C). Matches AttentionPoolLayer.forward."""
    B, L, C = x.shape
    assert q.shape == (B, C)
    assert C % num_heads == 0
    head_dim = C // num_heads
    scale = head_dim ** (-0.5)

    dtype_bytes = jnp.dtype(x.dtype).itemsize
    vmem_cap = _vmem_capacity_bytes()
    if block_b is None:
        block_b = _choose_batch_tile(B, L, C, dtype_bytes, vmem_cap)
    num_blocks = pl.cdiv(B, block_b)

    # Explicit VMEM ceiling: working set for the chosen tile + headroom, kept
    # under the chip's physical VMEM.
    work_bytes = block_b * _per_row_work_bytes(L, C, dtype_bytes)
    vmem_limit = int(min(max(work_bytes + (8 << 20), 32 << 20),
                         vmem_cap - (4 << 20)))

    cost = pl.CostEstimate(
        flops=4 * B * L * C,
        transcendentals=B * L,
        bytes_accessed=(B * L * C + 2 * B * C) * dtype_bytes,
    )

    return pl.pallas_call(
        functools.partial(_attn_pool_kernel, scale=scale),
        out_shape=jax.ShapeDtypeStruct((B, C), x.dtype),
        grid_spec=pltpu.PrefetchScalarGridSpec(
            num_scalar_prefetch=0,
            grid=(num_blocks,),
            in_specs=[
                pl.BlockSpec((block_b, L, C), lambda i: (i, 0, 0)),
                pl.BlockSpec((block_b, C), lambda i: (i, 0)),
            ],
            out_specs=pl.BlockSpec((block_b, C), lambda i: (i, 0)),
        ),
        compiler_params=pltpu.CompilerParams(
            dimension_semantics=("parallel",),
            vmem_limit_bytes=vmem_limit,
        ),
        cost_estimate=cost,
    )(x, q)


def _reference(x, q, num_heads=1):
    B, L, C = x.shape
    head_dim = C // num_heads
    scale = head_dim ** (-0.5)
    attn = jnp.einsum("bc,blc->bl", q, x) * scale
    attn = jax.nn.softmax(attn, axis=-1)
    return jnp.einsum("bl,blc->bc", attn, x)


if __name__ == "__main__":
    key = jax.random.PRNGKey(0)
    kx, kq, kx2, kq2 = jax.random.split(key, 4)

    # Small shapes implied by the module: B=2, L=8, C=32, num_heads=4 (head_dim=8).
    B, L, C, num_heads = 2, 8, 32, 4
    x = jax.random.normal(kx, (B, L, C), dtype=jnp.float32)
    q = jax.random.normal(kq, (B, C), dtype=jnp.float32)

    out = jax.block_until_ready(attention_pool(x, q, num_heads=num_heads))
    ref = _reference(x, q, num_heads=num_heads)
    assert out.shape == (B, C)
    assert jnp.allclose(out, ref, atol=2e-5, rtol=2e-5), "mismatch vs reference (small)"

    # Second shape exercising batch tiling + ragged last block (no padding of x).
    B2, L2, C2 = 37, 16, 128
    x2 = jax.random.normal(kx2, (B2, L2, C2), dtype=jnp.float32)
    q2 = jax.random.normal(kq2, (B2, C2), dtype=jnp.float32)
    out2 = jax.block_until_ready(attention_pool(x2, q2, num_heads=1))
    ref2 = _reference(x2, q2, num_heads=1)
    assert out2.shape == (B2, C2)
    assert jnp.allclose(out2, ref2, atol=2e-5, rtol=2e-5), "mismatch vs reference (ragged)"

    # Explicit small-tile ragged check (forces 5 grid steps, last block partial).
    out3 = jax.block_until_ready(attention_pool(x2, q2, num_heads=1, block_b=8))
    assert jnp.allclose(out3, ref2, atol=2e-5, rtol=2e-5), "mismatch vs reference (block_b=8)"

    print("KERNEL_OK")
</pallas_src>

<mosaic_0001>
module attributes {stable_mosaic.version = 11 : i64} {
  func.func @_attn_pool_kernel(%arg0: i32, %arg1: memref<2x8x32xf32, #tpu.memory_space<vmem>>, %arg2: memref<2x32xf32, #tpu.memory_space<vmem>>, %arg3: memref<2x32xf32, #tpu.memory_space<vmem>>) attributes {dimension_semantics = [#tpu.dimension_semantics<parallel>], iteration_bounds = array<i64: 1>, scalar_prefetch = 0 : i64, scratch_operands = 0 : i64, tpu.core_type = #tpu.core_type<tc>, window_params = [{transform_indices = @transform_0, window_bounds = array<i64: 2, 8, 32>}, {transform_indices = @transform_1, window_bounds = array<i64: 2, 32>}, {transform_indices = @transform_2, window_bounds = array<i64: 2, 32>}]} {
    %c0 = arith.constant 0 : index
    %c0_0 = arith.constant 0 : index
    %c0_1 = arith.constant 0 : index
    %0 = vector.load %arg1[%c0, %c0_0, %c0_1] : memref<2x8x32xf32, #tpu.memory_space<vmem>>, vector<2x8x32xf32>
    %c0_2 = arith.constant 0 : index
    %c0_3 = arith.constant 0 : index
    %1 = vector.load %arg2[%c0_2, %c0_3] : memref<2x32xf32, #tpu.memory_space<vmem>>, vector<2x32xf32>
    %2 = vector.shape_cast %1 : vector<2x32xf32> to vector<2x1x32xf32>
    %3 = vector.broadcast %2 : vector<2x1x32xf32> to vector<2x8x32xf32>
    %4 = arith.mulf %0, %3 : vector<2x8x32xf32>
    %cst = arith.constant dense<0.000000e+00> : vector<2x8xf32>
    %5 = vector.multi_reduction <add>, %4, %cst [2] : vector<2x8x32xf32> to vector<2x8xf32>
    %cst_4 = arith.constant 0.353553385 : f32
    %6 = vector.broadcast %cst_4 : f32 to vector<2x8xf32>
    %7 = arith.mulf %5, %6 : vector<2x8xf32>
    %cst_5 = arith.constant dense<0xFF800000> : vector<2xf32>
    %8 = vector.multi_reduction <maximumf>, %7, %cst_5 [1] : vector<2x8xf32> to vector<2xf32>
    %9 = vector.shape_cast %8 : vector<2xf32> to vector<2x1xf32>
    %10 = vector.broadcast %9 : vector<2x1xf32> to vector<2x8xf32>
    %11 = arith.subf %7, %10 : vector<2x8xf32>
    %12 = math.exp %11 : vector<2x8xf32>
    %cst_6 = arith.constant dense<0.000000e+00> : vector<2xf32>
    %13 = vector.multi_reduction <add>, %12, %cst_6 [1] : vector<2x8xf32> to vector<2xf32>
    %14 = vector.shape_cast %13 : vector<2xf32> to vector<2x1xf32>
    %15 = tpu.reciprocal %14 {approx = true} : vector<2x1xf32> -> vector<2x1xf32>
    %16 = arith.mulf %14, %15 : vector<2x1xf32>
    %cst_7 = arith.constant 2.000000e+00 : f32
    %17 = vector.broadcast %cst_7 : f32 to vector<2x1xf32>
    %18 = arith.subf %17, %16 : vector<2x1xf32>
    %19 = arith.mulf %15, %18 : vector<2x1xf32>
    %20 = vector.broadcast %19 : vector<2x1xf32> to vector<2x8xf32>
    %21 = arith.mulf %12, %20 : vector<2x8xf32>
    %22 = vector.shape_cast %21 : vector<2x8xf32> to vector<2x8x1xf32>
    %23 = vector.broadcast %22 : vector<2x8x1xf32> to vector<2x8x32xf32>
    %24 = arith.mulf %23, %0 : vector<2x8x32xf32>
    %cst_8 = arith.constant dense<0.000000e+00> : vector<2x32xf32>
    %25 = vector.multi_reduction <add>, %24, %cst_8 [1] : vector<2x8x32xf32> to vector<2x32xf32>
    %c0_9 = arith.constant 0 : index
    %c0_10 = arith.constant 0 : index
    %26 = vector.load %arg3[%c0_9, %c0_10] : memref<2x32xf32, #tpu.memory_space<vmem>>, vector<2x32xf32>
    tpu.vector_store %arg3[%c0_9, %c0_10], %25 {strides = array<i32>} : memref<2x32xf32, #tpu.memory_space<vmem>>, vector<2x32xf32>,
    return
  }
  func.func @transform_0(%arg0: i32) -> (i32, i32, i32) {
    %c0_i32 = arith.constant 0 : i32
    %c0_i32_0 = arith.constant 0 : i32
    %c0_i32_1 = arith.constant 0 : i32
    return %arg0, %c0_i32, %c0_i32_0 : i32, i32, i32
  }
  func.func @transform_1(%arg0: i32) -> (i32, i32) {
    %c0_i32 = arith.constant 0 : i32
    %c0_i32_0 = arith.constant 0 : i32
    return %arg0, %c0_i32 : i32, i32
  }
  func.func @transform_2(%arg0: i32) -> (i32, i32) {
    %c0_i32 = arith.constant 0 : i32
    %c0_i32_0 = arith.constant 0 : i32
    return %arg0, %c0_i32 : i32, i32
  }
}

</mosaic_0001>

<bundles_post_ra>
// kernel: tpu_custom_call.1
= control target key start
LH: loop header
LB: loop body
LE: loop exit
PB: predicated region body
PF: predicated region fallthrough
CT: control target
= control target key end

     0   :  { %7 = vsyncpa [#allocation3], 0  ;;  %s320_s0 = inlined_call_operand.hbm [shape: f32[2,8,32], index: 0, kind: input, shape index: {}]   ;;  %s321_s1 = inlined_call_operand.vmem [shape: f32[2,32], index: 1, kind: input, shape index: {}]   ;;  %s322_s2 = inlined_call_operand.hbm [shape: f32[2,32], index: 2, kind: output, shape index: {}]  }
   0x1   :  { %8 = vsyncpa [#allocation4], 0  ;;  %s257_s9 = smov [#allocation2]   ;;  %s209_s13 = scalar_lea.hbm %s320_s0, 256 }
   0x2   :  { %s14_s10 = sshll.u32 %s257_s9, 4  ;;  %p210_p0 = scmp.ne.s32.totalorder %s320_s0, %s209_s13  ;;  %s15_s10 = int_to_ptr.vmem [resolvable:$true] %s14_s10 }
   0x3   :  { %p213_p1 = scmp.lt.u32.totalorder %s209_s13, %s320_s0 }
   0x5   :  { %p215_p2 = pnand %p213_p1, %p210_p0 }
   0x7   :  { %218 = shalt.err (!%p215_p2)
}
   0x8   :  { %s219_s18 = scalar_lea.vmem %s15_s10, 256  ;;  %p224_p4 = scmp.lt.s32.totalorder %s15_s10, %s15_s10 }
   0x9   :  { %p220_p3 = scmp.ne.s32.totalorder %s15_s10, %s219_s18  ;;  %p225_p5 = scmp.lt.s32.totalorder %s219_s18, %s219_s18 }
   0xb   :  { %p226_p6 = por %p225_p5, %p224_p4 }
   0xd   :  { %p227_p7 = pnand %p226_p6, %p220_p3 }
   0xf   :  { %230 = shalt.err (!%p227_p7)
}
  0x10   :  { %s258_s19 = smov 128   ;;  %s259_s20 = smov 8  }
  0x11   :  { %20 = dma.hbm_to_vmem [thread:$0]  %s320_s0, 256, %s15_s10, [#allocation3], %s258_s19, %s258_s19, %s259_s20  }
  0x12   :  { %253 = dma.done.wait [#allocation3], 256  }
  0x13   :  { %254 = vsyncadd [#allocation3], 4294967040  ;;  %v41_v0 = vlaneseq  ;;  %v260_v1 = vmov 1966171168   ;;  %v26_v12 = vld [vmem:[#allocation2] sm:$0xff]  ;;  %vm64_vm0 = vcmask 261120  }
  0x14   :  { %v39_v2 = vunpack.c.l.s4 %v260_v1  ;;  %v194_v9 = vld.sshfl [vmem:[%s321_s1] sm:$0x11 pattern:$0x75316420]  ;;  %v27_v15 = vld [vmem:[#allocation2 + $0x8] sm:$0xff]  ;;  %vm85_vm1 = vcmask 1041409  }
  0x15   :  { %v290_v3 = vshrl.u32 %v41_v0, 7  ;;  %v76_v4 = vand.u32 127, %v41_v0  ;;  %v37_v10 = vcombine.high %v194_v9, %v194_v9  ;;  %vm88_vm2 = vcmask 58368   ;;  %s262_s0 = smov [#allocation5]  }
  0x16   :  { %v40_v5 = vunpack.c.0.s8 %v39_v2  ;;  %v261_v29 = vmov 0   ;;  %s185_s1 = sshll.u32 %s262_s0, 4  ;;  %vm177_vm3 = vcmask 254976   ;;  %s186_s1 = int_to_ptr.vmem [resolvable:$true] %s185_s1 }
  0x17   :  { %v79_v6 = vsub.s32 %v76_v4, %v290_v3  ;;  %v54_v8 = vsub.s32 0, %v290_v3  ;;  %202 = vset.pattern.permute.xlu0 %v261_v29  ;;  %201 = vset.pattern.permute.xlu1 %v261_v29  ;;  %v99_v30 = vsub.s32 1, %v290_v3  ;;  %s231_s25 = scalar_lea.vmem %s186_s1, 32  ;;  %p236_p9 = scmp.lt.s32.totalorder %s186_s1, %s186_s1 }
  0x18   :  { %v43_v7 = vsub.s32 %v40_v5, %v290_v3  ;;  %p232_p8 = scmp.ne.s32.totalorder %s186_s1, %s231_s25  ;;  %p237_p10 = scmp.lt.s32.totalorder %s231_s25, %s231_s25 }
  0x1a   :  { %v44_v11 = vrot.slane %v194_v9, %v43_v7  ;;  %v51_v14 = vrot.slane %v37_v10, %v43_v7  ;;  %p238_p11 = por %p237_p10, %p236_p9 }
  0x1c   :  { %v55_v13 = vrot.slane %v44_v11, %v54_v8  ;;  %v59_v17 = vrot.slane %v51_v14, %v54_v8  ;;  %p239_p12 = pnand %p238_p11, %p232_p8 }
  0x1e   :  { %v62_v16 = vmul.f32 %v55_v13, %v26_v12  ;;  %v63_v19 = vmul.f32 %v59_v17, %v27_v15 }
  0x20   :  { %v65_v18 = vsel %vm64_vm0, %v62_v16, 0.0  ;;  %v68_v20 = vsel %vm64_vm0, %v63_v19, 0.0 }
  0x21   :  { %66 = vadd.xlane.f32.xlu0 %v65_v18 }
  0x25   :  { %69 = vadd.xlane.f32.xlu0 %v68_v20 }
  0xae   :  { %v67_v21 = vpop.xlane.xlu0 %66 }
  0xaf   :  { %v71_v22 = vmul.f32 0.35355338, %v67_v21 }
  0xb1   :  { %v80_v25 = vrot.slane %v71_v22, %v79_v6 }
  0xb2   :  { %v70_v23 = vpop.xlane.xlu0 %69 }
  0xb3   :  { %v72_v24 = vmul.f32 0.35355338, %v70_v23 }
  0xb5   :  { %v84_v26 = vrot.slane %v72_v24, %v79_v6 }
  0xb7   :  { %v86_v27 = vsel %vm85_vm1, %v84_v26, %v80_v25 }
  0xb8   :  { %v89_v28 = vsel %vm88_vm2, %v86_v27, -inf }
  0xb9   :  { %90 = vmax.xlane.f32.xlu1 %v89_v28 }
 0x146   :  { %v91_v31 = vpop.xlane.xlu1 %90 }
 0x147   :  { %v96_v32 = vrot.slane %v91_v31, %v54_v8  ;;  %v100_v33 = vrot.slane %v91_v31, %v99_v30 }
 0x149   :  { %v103_v34 = vsub.f32 %v71_v22, %v96_v32  ;;  %v104_v35 = vsub.f32 %v72_v24, %v100_v33 }
 0x14b   :  { %v105_v36 = vmul.f32 1.442695, %v103_v34  ;;  %v107_v37 = vmul.f32 1.442695, %v104_v35 }
 0x14d   :  { %203 = vpow2.f32 %v105_v36 }
 0x14e   :  { %205 = vpow2.f32 %v107_v37 }
 0x157   :  { %v204_v38 = vpop.eup %203 }
 0x158   :  { %v206_v39 = vpop.eup %205  ;;  %112 = vperm.xlu1 %201, %v204_v38  }
 0x159   :  { %115 = vperm.xlu0 %202, %v206_v39  }
 0x1d7   :  { %v113_v40 = vpop.permute.xlu1 %112 }
 0x1d8   :  { %v116_v41 = vpop.permute.xlu0 %115  ;;  %v120_v42 = vrot.slane %v113_v40, %v79_v6 }
 0x1d9   :  { %v124_v43 = vrot.slane %v116_v41, %v79_v6 }
 0x1db   :  { %v125_v44 = vsel %vm85_vm1, %v124_v43, %v120_v42 }
 0x1dc   :  { %v127_v45 = vsel %vm88_vm2, %v125_v44, 0.0 }
 0x1dd   :  { %128 = vadd.xlane.f32.xlu1 %v127_v45 }
 0x26a   :  { %v129_v46 = vpop.xlane.xlu1 %128 }
 0x26b   :  { %207 = vrcp.f32 %v129_v46 }
 0x275   :  { %v208_v47 = vpop.eup %207 }
 0x276   :  { %v131_v48 = vmul.f32 %v208_v47, %v129_v46 }
 0x278   :  { %v132_v49 = vsub.f32 2.0, %v131_v48 }
 0x27a   :  { %v133_v50 = vmul.f32 %v208_v47, %v132_v49 }
 0x27c   :  { %v138_v51 = vrot.slane %v133_v50, %v54_v8  ;;  %v142_v52 = vrot.slane %v133_v50, %v99_v30 }
 0x27e   :  { %v145_v53 = vmul.f32 %v204_v38, %v138_v51  ;;  %v146_v54 = vmul.f32 %v206_v39, %v142_v52 }
 0x280   :  { %149 = vperm.xlu0 %202, %v145_v53  }
 0x284   :  { %154 = vperm.xlu0 %202, %v146_v54  }
 0x2ff   :  { %v150_v55 = vpop.permute.xlu0 %149 }
 0x300   :  { %v157_v56 = vmul.f32 %v150_v55, %v26_v12 }
 0x302   :  { %v159_v57 = vsel %vm64_vm0, %v157_v56, 0.0 }
 0x303   :  { %v160_v58 = vrot.slane %v159_v57, 4  ;;  %v155_v59 = vpop.permute.xlu0 %154 }
 0x304   :  { %v158_v60 = vmul.f32 %v155_v59, %v27_v15 }
 0x305   :  { %v161_v61 = vadd.f32 %v160_v58, %v159_v57 }
 0x306   :  { %v166_v62 = vsel %vm64_vm0, %v158_v60, 0.0 }
 0x307   :  { %v162_v63 = vrot.slane %v161_v61, 2  ;;  %v167_v0 = vrot.slane %v166_v62, 4 }
 0x309   :  { %v163_v1 = vadd.f32 %v162_v63, %v161_v61  ;;  %v168_v2 = vadd.f32 %v167_v0, %v166_v62 }
 0x30b   :  { %v169_v3 = vrot.slane %v168_v2, 2  ;;  %v164_v4 = vrot.slane %v163_v1, 1 }
 0x30d   :  { %v170_v5 = vadd.f32 %v169_v3, %v168_v2  ;;  %v165_v7 = vadd.f32 %v164_v4, %v163_v1 }
 0x30f   :  { %v171_v6 = vrot.slane %v170_v5, 1 }
 0x311   :  { %v172_v8 = vadd.f32 %v171_v6, %v170_v5 }
 0x313   :  { %v175_v9 = vsel %vm85_vm1, %v172_v8, %v165_v7 }
 0x314   :  { %178 = vst.msk [vmem:[#allocation5] sm:$0x3] %vm177_vm3, %v175_v9 }
 0x315   :  { %242 = shalt.err (!%p239_p12)
}
 0x316   :  { %s243_s28 = scalar_lea.hbm %s322_s2, 32 }
 0x317   :  { %p244_p13 = scmp.ne.s32.totalorder %s322_s2, %s243_s28  ;;  %p247_p0 = scmp.lt.u32.totalorder %s243_s28, %s322_s2 }
 0x319   :  { %p249_p1 = pnand %p247_p0, %p244_p13 }
 0x31b   :  { %252 = shalt.err (!%p249_p1)
}
 0x31c   :  { %188 = dma.vmem_to_hbm [thread:$0]  %s186_s1, 32, %s322_s2, [#allocation4]  }
 0x31d   :  { %255 = dma.done.wait [#allocation4], 32  }
 0x31e   :  { %256 = vsyncadd [#allocation4], 4294967264 }
 0x31f   :  { %192 = vsyncpa [#allocation3], 1 }
 0x320   :  { %193 = vsyncpa [#allocation4], 1 }

</bundles_post_ra>
